<compile_context>
chip_gen: v7x
topology: tpu7x:2x2x1
jax: 0.10.0
libtpu: 0.0.40
codegen_flags: <defaults>
</compile_context>

<pallas_src>
import jax
import jax.numpy as jnp
from jax.experimental import pallas as pl
from jax.experimental.pallas import tpu as pltpu

IN_FEATURES = 784
OUT_FEATURES = 10
N_PAD = 128          # lane-dense output width (multiple of 128)
TILE_B_MAX = 2048    # bf16 x tile ~3.2 MiB; 2x buffers + out/W ~9 MiB total
BATCH_ALIGN = 16     # bf16 sublane packing: keep batch tiles multiples of 16


def linear_kernel(x_ref, w_ref, b_ref, o_ref):
    # x: (TB, 784) bf16      w: (784, 128) bf16 (pre-transposed, out-padded)
    # b: (1, 128)  f32       o: (TB, 128)  f32
    # y = x @ W_pad + b, f32 accumulation on the MXU.
    acc = jnp.dot(x_ref[...], w_ref[...], preferred_element_type=jnp.float32)
    o_ref[...] = (acc + b_ref[...]).astype(o_ref.dtype)


def _select_batch_tile(B, tile_b):
    """Pick a batch tile; prefer tiles that divide B exactly (no activation pad)."""
    if tile_b is not None:
        tb = min(int(tile_b), B)
        if tb < B:
            tb = max(BATCH_ALIGN, (tb // BATCH_ALIGN) * BATCH_ALIGN)
        return tb
    if B <= TILE_B_MAX:
        # Guarantee >= 2 grid steps when it costs nothing (no padding) so the
        # "parallel" batch axis engages both v7x TensorCores.
        if B >= 256 and B % (2 * BATCH_ALIGN) == 0:
            return B // 2
        return B  # single full-extent block (any B allowed)
    # Large batch: largest aligned divisor of B that fits a tile.
    for tb in range(TILE_B_MAX, BATCH_ALIGN - 1, -BATCH_ALIGN):
        if B % tb == 0:
            return tb
    return TILE_B_MAX  # ragged batch; wrapper pads the tail (rare fallback)


def mnist_logistic_forward(x, weight, bias, *, tile_b=None):
    """x: (B, 784) f32, weight: (10, 784) f32 (PyTorch layout), bias: (10,) f32."""
    B = x.shape[0]

    # bf16 operands; accumulation remains f32 inside the kernel.
    x_bf = x.astype(jnp.bfloat16)

    # Pre-transposed, zero-padded weight: (784, 128) so the MXU sees a natural
    # (K, N) operand (no in-kernel transpose) and a full 128-wide N tile.
    w_pad = jnp.zeros((IN_FEATURES, N_PAD), jnp.bfloat16)
    w_pad = w_pad.at[:, :OUT_FEATURES].set(weight.T.astype(jnp.bfloat16))
    b_pad = jnp.zeros((1, N_PAD), jnp.float32).at[0, :OUT_FEATURES].set(
        bias.astype(jnp.float32))

    tb = _select_batch_tile(B, tile_b)
    n_blocks = pl.cdiv(B, tb)
    b_padded = n_blocks * tb
    # Tile selection avoids this in normal cases; pad only the ragged tail.
    x_in = x_bf if b_padded == B else jnp.pad(x_bf, ((0, b_padded - B), (0, 0)))

    out = pl.pallas_call(
        linear_kernel,
        out_shape=jax.ShapeDtypeStruct((b_padded, N_PAD), jnp.float32),
        grid_spec=pltpu.PrefetchScalarGridSpec(
            num_scalar_prefetch=0,
            grid=(n_blocks,),
            in_specs=[
                pl.BlockSpec((tb, IN_FEATURES), lambda i: (i, 0)),      # x: batch-tiled
                pl.BlockSpec((IN_FEATURES, N_PAD), lambda i: (0, 0)),   # W: resident
                pl.BlockSpec((1, N_PAD), lambda i: (0, 0)),             # bias: resident
            ],
            out_specs=pl.BlockSpec((tb, N_PAD), lambda i: (i, 0)),
        ),
        compiler_params=pltpu.CompilerParams(
            # Batch tiles are independent -> shard the grid across TensorCores.
            dimension_semantics=("parallel",),
            # Headroom for 2048-row double-buffered tiles on v5e's 16 MiB default.
            vmem_limit_bytes=32 * 1024 * 1024,
        ),
    )(x_in, w_pad, b_pad)

    # Return the exact nn.Linear(784, 10) output (f32, shape (B, 10)).
    # TODO(synk): downstream could consume the padded (B, 128) slab directly or
    # fuse log-softmax/NLL into this kernel to avoid this extra XLA slice pass.
    return out[:B, :OUT_FEATURES]


def _ref_forward(x, weight, bias):
    # Emulates the kernel's numerics: bf16 operands, f32 accumulation.
    xb = x.astype(jnp.bfloat16).astype(jnp.float32)
    wb = weight.astype(jnp.bfloat16).astype(jnp.float32)
    return xb @ wb.T + bias


if __name__ == "__main__":
    key = jax.random.PRNGKey(0)
    kw, kb, kx1, kx2, kx3, kx4 = jax.random.split(key, 6)

    # Deterministic parameter init (synthetic, mimics nn.Linear(784, 10) shapes).
    bound = 1.0 / (IN_FEATURES ** 0.5)
    weight = jax.random.uniform(
        kw, (OUT_FEATURES, IN_FEATURES), jnp.float32, -bound, bound)
    bias = jax.random.uniform(kb, (OUT_FEATURES,), jnp.float32, -bound, bound)

    def check(x, **kwargs):
        out = jax.block_until_ready(mnist_logistic_forward(x, weight, bias, **kwargs))
        ref = _ref_forward(x, weight, bias)
        assert out.shape == (x.shape[0], OUT_FEATURES)
        err = float(jnp.max(jnp.abs(out - ref)))
        assert jnp.allclose(out, ref, atol=1e-2, rtol=1e-2), err

    # 1) tiny batch -> single full-extent block.
    check(jax.random.normal(kx1, (8, IN_FEATURES), jnp.float32))
    # 2) clean multi-block pipelined grid (no batch padding).
    check(jax.random.normal(kx2, (32, IN_FEATURES), jnp.float32), tile_b=16)
    # 3) ragged-tail fallback path (pads 24 -> 32).
    check(jax.random.normal(kx3, (24, IN_FEATURES), jnp.float32), tile_b=16)
    # 4) automatic >=2-tile split (engages both v7x TensorCores).
    check(jax.random.normal(kx4, (256, IN_FEATURES), jnp.float32))

    print("KERNEL_OK")
</pallas_src>

<mosaic_0001>
module attributes {stable_mosaic.version = 11 : i64} {
  func.func @linear_kernel(%arg0: i32, %arg1: memref<8x784xbf16, #tpu.memory_space<vmem>>, %arg2: memref<784x128xbf16, #tpu.memory_space<vmem>>, %arg3: memref<1x128xf32, #tpu.memory_space<vmem>>, %arg4: memref<8x128xf32, #tpu.memory_space<vmem>>) attributes {dimension_semantics = [#tpu.dimension_semantics<parallel>], iteration_bounds = array<i64: 1>, scalar_prefetch = 0 : i64, scratch_operands = 0 : i64, tpu.core_type = #tpu.core_type<tc>, window_params = [{transform_indices = @transform_0, window_bounds = array<i64: 8, 784>}, {pipeline_mode = #tpu.pipeline_mode<synchronous>, transform_indices = @transform_1, window_bounds = array<i64: 784, 128>}, {pipeline_mode = #tpu.pipeline_mode<synchronous>, transform_indices = @transform_2, window_bounds = array<i64: 1, 128>}, {transform_indices = @transform_3, window_bounds = array<i64: 8, 128>}]} {
    %c0 = arith.constant 0 : index
    %c0_0 = arith.constant 0 : index
    %0 = vector.load %arg1[%c0, %c0_0] : memref<8x784xbf16, #tpu.memory_space<vmem>>, vector<8x784xbf16>
    %c0_1 = arith.constant 0 : index
    %c0_2 = arith.constant 0 : index
    %1 = vector.load %arg2[%c0_1, %c0_2] : memref<784x128xbf16, #tpu.memory_space<vmem>>, vector<784x128xbf16>
    %cst = arith.constant dense<0.000000e+00> : vector<8x128xf32>
    %2 = tpu.matmul %0, %1, %cst {dimension_numbers = #tpu.dot_dimension_numbers<[1], [0], [0], [1], [0, 0, 1, 1], [], []>} : vector<8x784xbf16>, vector<784x128xbf16>, vector<8x128xf32> -> vector<8x128xf32>
    %c0_3 = arith.constant 0 : index
    %c0_4 = arith.constant 0 : index
    %3 = vector.load %arg3[%c0_3, %c0_4] : memref<1x128xf32, #tpu.memory_space<vmem>>, vector<1x128xf32>
    %4 = vector.broadcast %3 : vector<1x128xf32> to vector<8x128xf32>
    %5 = arith.addf %2, %4 : vector<8x128xf32>
    %c0_5 = arith.constant 0 : index
    %c0_6 = arith.constant 0 : index
    %6 = vector.load %arg4[%c0_5, %c0_6] : memref<8x128xf32, #tpu.memory_space<vmem>>, vector<8x128xf32>
    tpu.vector_store %arg4[%c0_5, %c0_6], %5 {strides = array<i32>} : memref<8x128xf32, #tpu.memory_space<vmem>>, vector<8x128xf32>,
    return
  }
  func.func @transform_0(%arg0: i32) -> (i32, i32) {
    %c0_i32 = arith.constant 0 : i32
    %c0_i32_0 = arith.constant 0 : i32
    return %arg0, %c0_i32 : i32, i32
  }
  func.func @transform_1(%arg0: i32) -> (i32, i32) {
    %c0_i32 = arith.constant 0 : i32
    %c0_i32_0 = arith.constant 0 : i32
    %c0_i32_1 = arith.constant 0 : i32
    return %c0_i32, %c0_i32_0 : i32, i32
  }
  func.func @transform_2(%arg0: i32) -> (i32, i32) {
    %c0_i32 = arith.constant 0 : i32
    %c0_i32_0 = arith.constant 0 : i32
    %c0_i32_1 = arith.constant 0 : i32
    return %c0_i32, %c0_i32_0 : i32, i32
  }
  func.func @transform_3(%arg0: i32) -> (i32, i32) {
    %c0_i32 = arith.constant 0 : i32
    %c0_i32_0 = arith.constant 0 : i32
    return %arg0, %c0_i32 : i32, i32
  }
}

</mosaic_0001>

<bundles_post_ra>
// kernel: tpu_custom_call.1
= control target key start
LH: loop header
LB: loop body
LE: loop exit
PB: predicated region body
PF: predicated region fallthrough
CT: control target
= control target key end

     0   :  { %8 = vsyncpa [#allocation3], 0  ;;  %s990_s0 = inlined_call_operand.hbm [shape: bf16[8,784], index: 0, kind: input, shape index: {}]   ;;  %s991_s1 = inlined_call_operand.hbm [shape: bf16[784,128], index: 1, kind: input, shape index: {}]   ;;  %s992_s2 = inlined_call_operand.vmem [shape: f32[1,128], index: 2, kind: input, shape index: {}]   ;;  %s993_s3 = inlined_call_operand.hbm [shape: f32[8,128], index: 3, kind: output, shape index: {}]  }
   0x1   :  { %9 = vsyncpa [#allocation6], 0 }
   0x2   :  { %10 = vsyncpa [#allocation4], 0  ;;  %s917_s12 = smov [#allocation2]   ;;  %s918_s14 = smov [#allocation5]  }
   0x3   :  { %s17_s13 = sshll.u32 %s917_s12, 4  ;;  %s26_s15 = sshll.u32 %s918_s14, 4  ;;  %s18_s13 = int_to_ptr.vmem [resolvable:$true] %s17_s13  ;;  %s944_s15 = int_to_ptr.vmem [resolvable:$true] %s26_s15 }
   0x4   :  { %s845_s18 = scalar_lea.hbm %s990_s0, 448 }
   0x5   :  { %p846_p0 = scmp.ne.s32.totalorder %s990_s0, %s845_s18  ;;  %p849_p1 = scmp.lt.u32.totalorder %s845_s18, %s990_s0 }
   0x7   :  { %p851_p2 = pnand %p849_p1, %p846_p0 }
   0x9   :  { %854 = shalt.err (!%p851_p2)
}
   0xa   :  { %s855_s23 = scalar_lea.vmem %s18_s13, 448  ;;  %p860_p4 = scmp.lt.s32.totalorder %s18_s13, %s18_s13 }
   0xb   :  { %p856_p3 = scmp.ne.s32.totalorder %s18_s13, %s855_s23  ;;  %p861_p5 = scmp.lt.s32.totalorder %s855_s23, %s855_s23 }
   0xd   :  { %p862_p6 = por %p861_p5, %p860_p4 }
   0xf   :  { %p863_p7 = pnand %p862_p6, %p856_p3 }
  0x11   :  { %866 = shalt.err (!%p863_p7)
}
  0x12   :  { %20 = dma.hbm_to_vmem [thread:$0]  %s990_s0, 448, %s18_s13, [#allocation3]  }
  0x13   :  { %s867_s28 = scalar_lea.hbm %s991_s1, 6272 }
  0x14   :  { %p868_p8 = scmp.ne.s32.totalorder %s991_s1, %s867_s28  ;;  %p871_p9 = scmp.lt.u32.totalorder %s867_s28, %s991_s1 }
  0x16   :  { %p873_p10 = pnand %p871_p9, %p868_p8 }
  0x18   :  { %876 = shalt.err (!%p873_p10)
}
  0x19   :  { %s877_s6 = scalar_lea.vmem %s944_s15, 6272  ;;  %p882_p12 = scmp.lt.s32.totalorder %s944_s15, %s944_s15 }
  0x1a   :  { %p878_p11 = scmp.ne.s32.totalorder %s944_s15, %s877_s6  ;;  %p883_p13 = scmp.lt.s32.totalorder %s877_s6, %s877_s6 }
  0x1c   :  { %p884_p0 = por %p883_p13, %p882_p12 }
  0x1e   :  { %p885_p1 = pnand %p884_p0, %p878_p11 }
  0x20   :  { %888 = shalt.err (!%p885_p1)
}
  0x21   :  { %s919_s0 = smov 64   ;;  %s920_s7 = smov 4  }
  0x22   :  { %32 = dma.hbm_to_vmem [thread:$0]  %s991_s1, 6272, %s944_s15, [#allocation6], %s919_s0, %s919_s0, %s920_s7  }
  0x23   :  { %911 = dma.done.wait [#allocation3], 448  }
  0x24   :  { %912 = vsyncadd [#allocation3], 4294966848 }
  0x25   :  { %913 = dma.done.wait [#allocation6], 6272  }
  0x26   :  { %914 = vsyncadd [#allocation6], 4294961024  ;;  %v789_v0 = vld [vmem:[#allocation5 + $0x40] sm:$0xff]   ;;  %v793_v4 = vld [vmem:[#allocation5 + $0x48] sm:$0xff]   ;;  %v921_v43 = vmov 0.0   ;;  %vm922_vm0 = vmmov 0  }
  0x27   :  { %v790_v1 = vld [vmem:[#allocation5] sm:$0xff]   ;;  %708 = vmatprep.subr.bf16.mxu0 %v789_v0  ;;  %v794_v5 = vld [vmem:[#allocation5 + $0x8] sm:$0xff]   ;;  %v797_v8 = vld [vmem:[#allocation5 + $0x50] sm:$0xff]   ;;  %vm469_vm1 = vcmask 130048  }
  0x28   :  { %v791_v2 = vld [vmem:[#allocation5 + $0xc0] sm:$0xff]   ;;  %709 = vmatpush3.bf16.msra.mxu0 %v790_v1  ;;  %v795_v6 = vld [vmem:[#allocation5 + $0xc8] sm:$0xff]   ;;  %v798_v9 = vld [vmem:[#allocation5 + $0x10] sm:$0xff]  }
  0x29   :  { %v792_v3 = vld [vmem:[#allocation5 + $0x80] sm:$0xff]   ;;  %730 = vmatprep.subr.bf16.mxu1 %v791_v2  ;;  %710 = vmatprep.subr.bf16.mxu0 %v793_v4  ;;  %v796_v7 = vld [vmem:[#allocation5 + $0x88] sm:$0xff]   ;;  %v799_v10 = vld [vmem:[#allocation5 + $0xd0] sm:$0xff]  }
  0x2a   :  { %731 = vmatpush3.bf16.msra.mxu1 %v792_v3  ;;  %v800_v11 = vld [vmem:[#allocation5 + $0x90] sm:$0xff]   ;;  %v801_v12 = vld [vmem:[#allocation5 + $0x58] sm:$0xff]   ;;  %v805_v16 = vld [vmem:[#allocation5 + $0x60] sm:$0xff]  }
  0x2b   :  { %732 = vmatprep.subr.bf16.mxu1 %v795_v6  ;;  %v802_v13 = vld [vmem:[#allocation5 + $0x18] sm:$0xff]   ;;  %v806_v17 = vld [vmem:[#allocation5 + $0x20] sm:$0xff]   ;;  %v809_v20 = vld [vmem:[#allocation5 + $0x68] sm:$0xff]  }
  0x2c   :  { %711 = vmatpush3.bf16.msra.mxu0 %v794_v5  ;;  %v803_v14 = vld [vmem:[#allocation5 + $0xd8] sm:$0xff]   ;;  %v807_v18 = vld [vmem:[#allocation5 + $0xe0] sm:$0xff]   ;;  %v810_v21 = vld [vmem:[#allocation5 + $0x28] sm:$0xff]  }
  0x2d   :  { %712 = vmatprep.subr.bf16.mxu0 %v797_v8  ;;  %v804_v15 = vld [vmem:[#allocation5 + $0x98] sm:$0xff]   ;;  %v808_v19 = vld [vmem:[#allocation5 + $0xa0] sm:$0xff]   ;;  %v811_v22 = vld [vmem:[#allocation5 + $0xe8] sm:$0xff]  }
  0x2e   :  { %733 = vmatpush3.bf16.msra.mxu1 %v796_v7  ;;  %v812_v23 = vld [vmem:[#allocation5 + $0xa8] sm:$0xff]   ;;  %v813_v24 = vld [vmem:[#allocation5 + $0x70] sm:$0xff]   ;;  %v817_v28 = vld [vmem:[#allocation5 + $0x78] sm:$0xff]  }
  0x2f   :  { %734 = vmatprep.subr.bf16.mxu1 %v799_v10  ;;  %v814_v25 = vld [vmem:[#allocation5 + $0x30] sm:$0xff]   ;;  %v818_v29 = vld [vmem:[#allocation5 + $0x38] sm:$0xff]   ;;  %v42_v31 = vld [vmem:[#allocation2] sm:$0xff] }
  0x30   :  { %713 = vmatpush3.bf16.msra.mxu0 %v798_v9  ;;  %v815_v26 = vld [vmem:[#allocation5 + $0xf0] sm:$0xff]   ;;  %v819_v30 = vld [vmem:[#allocation5 + $0xf8] sm:$0xff]   ;;  %v651_v32 = vcombine.low %v42_v31, %v42_v31  ;;  %v652_v33 = vcombine.high %v42_v31, %v42_v31  ;;  %v823_v35 = vld [vmem:[#allocation5 + $0x140] sm:$0xff]  }
  0x31   :  { %714 = vmatprep.subr.bf16.mxu0 %v801_v12  ;;  %v816_v27 = vld [vmem:[#allocation5 + $0xb0] sm:$0xff]   ;;  %v822_v34 = vld [vmem:[#allocation5 + $0xb8] sm:$0xff]   ;;  %v826_v39 = vld [vmem:[#allocation5 + $0x100] sm:$0xff]  }
  0x32   :  { %735 = vmatpush3.bf16.msra.mxu1 %v800_v11  ;;  %v43_v36 = vld [vmem:[#allocation2 + $0x8] sm:$0xff]  ;;  %505 = vmatprep.mubr.bf16.mxu0 %v652_v33  ;;  %v831_v45 = vld [vmem:[#allocation5 + $0x158] sm:$0xff]   ;;  %v833_v47 = vld [vmem:[#allocation5 + $0x160] sm:$0xff]  }
  0x33   :  { %736 = vmatprep.subr.bf16.mxu1 %v803_v14  ;;  %v653_v37 = vcombine.low %v43_v36, %v43_v36  ;;  %v654_v38 = vcombine.high %v43_v36, %v43_v36  ;;  %v827_v40 = vld [vmem:[#allocation5 + $0x148] sm:$0xff]   ;;  %v829_v42 = vld [vmem:[#allocation5 + $0x150] sm:$0xff]   ;;  %v832_v46 = vld [vmem:[#allocation5 + $0x118] sm:$0xff]  }
  0x34   :  { %715 = vmatpush3.bf16.msra.mxu0 %v802_v13  ;;  %v828_v41 = vld [vmem:[#allocation5 + $0x108] sm:$0xff]   ;;  %v830_v44 = vld [vmem:[#allocation5 + $0x110] sm:$0xff]   ;;  %v834_v48 = vld [vmem:[#allocation5 + $0x120] sm:$0xff]  }
  0x35   :  { %716 = vmatprep.subr.bf16.mxu0 %v805_v16  ;;  %545 = vmatprep.mubr.bf16.mxu1 %v654_v38  ;;  %v835_v49 = vld [vmem:[#allocation5 + $0x168] sm:$0xff]   ;;  %v841_v50 = vld [vmem:[#allocation5 + $0x180] sm:$0xff]   ;;  %v44_v51 = vld [vmem:[#allocation2 + $0x10] sm:$0xff] }
  0x36   :  { %737 = vmatpush3.bf16.msra.mxu1 %v804_v15  ;;  %v656_v52 = vcombine.high %v44_v51, %v44_v51  ;;  %v844_v53 = vld [vmem:[#allocation2 + $0x18] ss:$0 sps:$4 sm:$0xff]   ;;  %v836_v54 = vld [vmem:[#allocation5 + $0x128] sm:$0xff]   ;;  %v837_v55 = vld [vmem:[#allocation5 + $0x170] sm:$0xff]   ;;  %v655_v59 = vcombine.low %v44_v51, %v44_v51 }
  0x37   :  { %738 = vmatprep.subr.bf16.mxu1 %v807_v18  ;;  %v838_v56 = vld [vmem:[#allocation5 + $0x130] sm:$0xff]   ;;  %v839_v57 = vld [vmem:[#allocation5 + $0x178] sm:$0xff]   ;;  %v650_v61 = vld [vmem:[%s992_s2] ss:$0 sm:$0xff]  ;;  %s923_s2 = smov [#allocation7]  }
  0x38   :  { %717 = vmatpush3.bf16.msra.mxu0 %v806_v17  ;;  %v840_v58 = vld [vmem:[#allocation5 + $0x138] sm:$0xff]   ;;  %s640_s11 = sshll.u32 %s923_s2, 4  ;;  %s641_s11 = int_to_ptr.vmem [resolvable:$true] %s640_s11 }
  0x39   :  { %718 = vmatprep.subr.bf16.mxu0 %v809_v20  ;;  %s889_s12 = scalar_lea.vmem %s641_s11, 128  ;;  %p894_p3 = scmp.lt.s32.totalorder %s641_s11, %s641_s11 }
  0x3a   :  { %739 = vmatpush3.bf16.msra.mxu1 %v808_v19  ;;  %p890_p2 = scmp.ne.s32.totalorder %s641_s11, %s889_s12  ;;  %p895_p4 = scmp.lt.s32.totalorder %s889_s12, %s889_s12 }
  0x3b   :  { %740 = vmatprep.subr.bf16.mxu1 %v811_v22 }
  0x3c   :  { %719 = vmatpush3.bf16.msra.mxu0 %v810_v21  ;;  %p896_p5 = por %p895_p4, %p894_p3 }
  0x3d   :  { %720 = vmatprep.subr.bf16.mxu0 %v813_v24 }
  0x3e   :  { %741 = vmatpush3.bf16.msra.mxu1 %v812_v23  ;;  %p897_p6 = pnand %p896_p5, %p890_p2 }
  0x3f   :  { %742 = vmatprep.subr.bf16.mxu1 %v815_v26 }
  0x40   :  { %721 = vmatpush3.bf16.msra.mxu0 %v814_v25 }
  0x41   :  { %722 = vmatprep.subr.bf16.mxu0 %v817_v28 }
  0x42   :  { %743 = vmatpush3.bf16.msra.mxu1 %v816_v27 }
  0x43   :  { %744 = vmatprep.subr.bf16.mxu1 %v819_v30 }
  0x44   :  { %723 = vmatpush3.bf16.msra.mxu0 %v818_v29 }
  0x45   :  { %752 = vmatprep.subr.bf16.mxu0 %v823_v35 }
  0x46   :  { %745 = vmatpush3.bf16.msra.mxu1 %v822_v34 }
  0x47   :  { %506 = vmatmul.mubr.bf16.vlgmr.msra.gmra.mrb[0].mxu0 %v651_v32  ;;  %776 = vmatprep.subr.bf16.mxu1 %v921_v43 }
  0x48   :  { %753 = vmatpush3.bf16.msra.mxu0 %v826_v39  ;;  %585 = vmatprep.mubr.bf16.mxu0 %v656_v52 }
  0x49   :  { %546 = vmatmul.mubr.bf16.vlgmr.msra.gmra.mrb[0].mxu1 %v653_v37  ;;  %754 = vmatprep.subr.bf16.mxu0 %v827_v40 }
  0x4a   :  { %778 = vmatprep.mubr.msk.bf16.mxu1 %vm922_vm0, %v921_v43  ;;  %777 = vmatpush3.bf16.msra.mxu1 %v841_v50 }
  0x4c   :  { %755 = vmatpush3.bf16.msra.mxu0 %v828_v41 }
  0x4d   :  { %756 = vmatprep.subr.bf16.mxu0 %v829_v42 }
  0x50   :  { %757 = vmatpush3.bf16.msra.mxu0 %v830_v44 }
  0x51   :  { %758 = vmatprep.subr.bf16.mxu0 %v831_v45  ;;  %779 = vmatmul.mubr.msk.bf16.vlgmr.msra.gmra.mrb[4].mxu1 %vm469_vm1, %v844_v53 }
  0x54   :  { %759 = vmatpush3.bf16.msra.mxu0 %v832_v46 }
  0x55   :  { %760 = vmatprep.subr.bf16.mxu0 %v833_v47 }
  0x58   :  { %761 = vmatpush3.bf16.msra.mxu0 %v834_v48 }
  0x59   :  { %762 = vmatprep.subr.bf16.mxu0 %v835_v49 }
  0x5c   :  { %763 = vmatpush3.bf16.msra.mxu0 %v836_v54 }
  0x5d   :  { %764 = vmatprep.subr.bf16.mxu0 %v837_v55 }
  0x60   :  { %765 = vmatpush3.bf16.msra.mxu0 %v838_v56 }
  0x61   :  { %766 = vmatprep.subr.bf16.mxu0 %v839_v57 }
  0x64   :  { %767 = vmatpush3.bf16.msra.mxu0 %v840_v58 }
  0x67   :  { %586 = vmatmul.mubr.bf16.vlgmr.msra.gmra.mrb[4].mxu0 %v655_v59 }
 0x11a   :  { %v724_v60 = vpop.f32.mrb[0].mxu0 }
 0x11b   :  { %v725_v62 = vpop.f32.mrb[1].mxu0 }
 0x11c   :  { %v726_v63 = vadd.f32 %v725_v62, %v724_v60  ;;  %v727_v0 = vpop.f32.mrb[2].mxu0  ;;  %v746_v1 = vpop.f32.mrb[0].mxu1 }
 0x11d   :  { %v728_v2 = vpop.f32.mrb[3].mxu0  ;;  %v747_v3 = vpop.f32.mrb[1].mxu1 }
 0x11e   :  { %v508_v4 = vadd.f32 %v726_v63, %v650_v61  ;;  %v748_v5 = vadd.f32 %v747_v3, %v746_v1  ;;  %v749_v6 = vpop.f32.mrb[2].mxu1 }
 0x11f   :  { %v750_v7 = vpop.f32.mrb[3].mxu1 }
 0x120   :  { %v548_v8 = vadd.f32 %v748_v5, %v508_v4 }
 0x124   :  { %v627_v9 = vpop.f32.mrb[4].mxu1 }
 0x125   :  { %v780_v10 = vpop.f32.mrb[5].mxu1 }
 0x126   :  { %v630_v11 = vpop.f32.mrb[6].mxu1 }
 0x127   :  { %v781_v12 = vpop.f32.mrb[7].mxu1 }
 0x13a   :  { %v768_v13 = vpop.f32.mrb[4].mxu0 }
 0x13b   :  { %v769_v14 = vpop.f32.mrb[5].mxu0 }
 0x13c   :  { %v770_v15 = vadd.f32 %v769_v14, %v768_v13  ;;  %v771_v16 = vpop.f32.mrb[6].mxu0 }
 0x13d   :  { %v772_v17 = vpop.f32.mrb[7].mxu0 }
 0x13e   :  { %v588_v18 = vadd.f32 %v770_v15, %v548_v8 }
 0x140   :  { %v628_v19 = vadd.f32 %v627_v9, %v588_v18 }
 0x142   :  { %633 = vst [vmem:[#allocation7] sm:$0xff] %v628_v19 }
 0x143   :  { %900 = shalt.err (!%p897_p6)
}
 0x144   :  { %s901_s15 = scalar_lea.hbm %s993_s3, 128 }
 0x145   :  { %p902_p7 = scmp.ne.s32.totalorder %s993_s3, %s901_s15  ;;  %p905_p8 = scmp.lt.u32.totalorder %s901_s15, %s993_s3 }
 0x147   :  { %p907_p9 = pnand %p905_p8, %p902_p7 }
 0x149   :  { %910 = shalt.err (!%p907_p9)
}
 0x14a   :  { %643 = dma.vmem_to_hbm [thread:$0]  %s641_s11, 128, %s993_s3, [#allocation4]  }
 0x14b   :  { %915 = dma.done.wait [#allocation4], 128  }
 0x14c   :  { %916 = vsyncadd [#allocation4], 4294967168 }
 0x14d   :  { %647 = vsyncpa [#allocation3], 1 }
 0x14e   :  { %648 = vsyncpa [#allocation6], 1 }
 0x14f   :  { %649 = vsyncpa [#allocation4], 1 }

</bundles_post_ra>
